<compile_context>
chip_gen: v7x
topology: tpu7x:2x2x1
jax: 0.10.0
libtpu: 0.0.40
codegen_flags: <defaults>
</compile_context>

<pallas_src>
import jax
import jax.numpy as jnp
from jax import lax
from jax.experimental import pallas as pl
from jax.experimental.pallas import tpu as pltpu


def ovanet_kernel(x_ref, w1_ref, b1_ref, w2_ref, b2_ref, o_ref):
    # Bottleneck linear: (tile_b, D) @ (D, H) + (1, H)  -> MXU, f32 accumulate.
    x = x_ref[...]
    embs = jnp.dot(x, w1_ref[...], preferred_element_type=jnp.float32) + b1_ref[...]

    # dropout -> identity in eval mode.

    # F.normalize: x / max(||x||_2, 1e-12).  rsqrt (EUP) + multiply (VPU);
    # clamping sum-of-squares at 1e-24 is identical to clamping the norm at
    # 1e-12 for the division.
    sumsq = jnp.sum(embs * embs, axis=-1, keepdims=True)
    inv_norm = lax.rsqrt(jnp.maximum(sumsq, 1e-24))
    embs = embs * inv_norm

    # Classifier linear: (tile_b, H) @ (H, numy) + (1, numy).
    logits = jnp.dot(embs, w2_ref[...], preferred_element_type=jnp.float32) + b2_ref[...]

    # loss_with_logits = False -> sigmoid.
    o_ref[...] = jax.nn.sigmoid(logits)


def _pick_tile_b(B, tf_dims, H, numy, max_tile_b, vmem_budget_bytes):
    """Largest multiple-of-8 row tile whose working set fits the VMEM budget."""
    bytes_f32 = 4
    # Grid-invariant residents: both weight matrices + biases.
    resident = (tf_dims * H + H + H * numy + numy) * bytes_f32
    # Per-row streamed bytes: x tile + out tile, each double-buffered by the
    # BlockSpec pipeline, plus the in-kernel f32 intermediates (embs, logits).
    per_row = (2 * tf_dims + 2 * numy + H + numy) * bytes_f32
    avail = max(vmem_budget_bytes - resident, 8 * per_row)
    tile_b = avail // per_row
    tile_b = min(tile_b, max_tile_b, ((B + 7) // 8) * 8)
    tile_b = max((tile_b // 8) * 8, 8)
    return int(tile_b)


def ovanet_forward(x, w1, b1, w2, b2, *, max_tile_b=1024,
                   vmem_budget_bytes=24 * 1024 * 1024):
    """x: (B, tf_dims); w1: (tf_dims, H); b1: (1, H); w2: (H, numy); b2: (1, numy)."""
    B, tf_dims = x.shape
    H = w1.shape[1]
    numy = w2.shape[1]

    tile_b = _pick_tile_b(B, tf_dims, H, numy, max_tile_b, vmem_budget_bytes)
    grid = (pl.cdiv(B, tile_b),)

    # x and out stream per grid step; weights/biases are grid-invariant and
    # stay resident in VMEM across the whole grid.
    x_spec = pl.BlockSpec((tile_b, tf_dims), lambda i: (i, 0))
    w1_spec = pl.BlockSpec((tf_dims, H), lambda i: (0, 0))
    b1_spec = pl.BlockSpec((1, H), lambda i: (0, 0))
    w2_spec = pl.BlockSpec((H, numy), lambda i: (0, 0))
    b2_spec = pl.BlockSpec((1, numy), lambda i: (0, 0))
    out_spec = pl.BlockSpec((tile_b, numy), lambda i: (i, 0))

    cost = pl.CostEstimate(
        flops=2 * B * (tf_dims * H + H * numy),
        transcendentals=2 * B * numy + B,   # sigmoid exp + rsqrt (approx)
        bytes_accessed=4 * (B * tf_dims + tf_dims * H + H + H * numy + numy
                            + B * numy),
    )

    return pl.pallas_call(
        ovanet_kernel,
        out_shape=jax.ShapeDtypeStruct((B, numy), jnp.float32),
        grid=grid,
        in_specs=[x_spec, w1_spec, b1_spec, w2_spec, b2_spec],
        out_specs=out_spec,
        compiler_params=pltpu.CompilerParams(
            dimension_semantics=("parallel",),
            vmem_limit_bytes=64 * 1024 * 1024,
        ),
        cost_estimate=cost,
    )(x, w1, b1, w2, b2)


def _reference(x, w1, b1, w2, b2):
    embs = x @ w1 + b1
    norm = jnp.sqrt(jnp.sum(embs * embs, axis=-1, keepdims=True))
    embs = embs / jnp.maximum(norm, 1e-12)
    return jax.nn.sigmoid(embs @ w2 + b2)


if __name__ == "__main__":
    # Small shapes consistent with the module:
    #   batch=8, tf_dims=32, bottleneck_dim=32 (= embs_dim), numy=128
    B, TF_DIMS, BOTTLENECK, NUMY = 8, 32, 32, 128

    key = jax.random.PRNGKey(0)
    k_x, k_w1, k_b1, k_w2, k_b2, k_x2 = jax.random.split(key, 6)

    x = jax.random.normal(k_x, (B, TF_DIMS), dtype=jnp.float32)

    # Deterministic parameter init (uniform, mimicking nn.Linear's scale).
    lim1 = 1.0 / (TF_DIMS ** 0.5)
    w1 = jax.random.uniform(k_w1, (TF_DIMS, BOTTLENECK), jnp.float32, -lim1, lim1)
    b1 = jax.random.uniform(k_b1, (1, BOTTLENECK), jnp.float32, -lim1, lim1)
    lim2 = 1.0 / (BOTTLENECK ** 0.5)
    w2 = jax.random.uniform(k_w2, (BOTTLENECK, NUMY), jnp.float32, -lim2, lim2)
    b2 = jax.random.uniform(k_b2, (1, NUMY), jnp.float32, -lim2, lim2)

    out = ovanet_forward(x, w1, b1, w2, b2)
    jax.block_until_ready(out)

    ref = _reference(x, w1, b1, w2, b2)
    assert out.shape == (B, NUMY)
    assert jnp.allclose(out, ref, atol=1e-5, rtol=1e-5)

    # Second check: batch not divisible by the tile, grid > 1, partial last
    # block exercised (masked writeback of the out-of-bounds rows).
    B2 = 20
    x2 = jax.random.normal(k_x2, (B2, TF_DIMS), dtype=jnp.float32)
    out2 = ovanet_forward(x2, w1, b1, w2, b2, max_tile_b=8)
    jax.block_until_ready(out2)
    ref2 = _reference(x2, w1, b1, w2, b2)
    assert out2.shape == (B2, NUMY)
    assert jnp.allclose(out2, ref2, atol=1e-5, rtol=1e-5)

    print("KERNEL_OK")
</pallas_src>

<mosaic_0001>
module attributes {stable_mosaic.version = 11 : i64} {
  func.func @ovanet_kernel(%arg0: i32, %arg1: memref<8x32xf32, #tpu.memory_space<vmem>>, %arg2: memref<32x32xf32, #tpu.memory_space<vmem>>, %arg3: memref<1x32xf32, #tpu.memory_space<vmem>>, %arg4: memref<32x128xf32, #tpu.memory_space<vmem>>, %arg5: memref<1x128xf32, #tpu.memory_space<vmem>>, %arg6: memref<8x128xf32, #tpu.memory_space<vmem>>) attributes {dimension_semantics = [#tpu.dimension_semantics<parallel>], iteration_bounds = array<i64: 1>, scalar_prefetch = 0 : i64, scratch_operands = 0 : i64, tpu.core_type = #tpu.core_type<tc>, window_params = [{transform_indices = @transform_0, window_bounds = array<i64: 8, 32>}, {pipeline_mode = #tpu.pipeline_mode<synchronous>, transform_indices = @transform_1, window_bounds = array<i64: 32, 32>}, {pipeline_mode = #tpu.pipeline_mode<synchronous>, transform_indices = @transform_2, window_bounds = array<i64: 1, 32>}, {pipeline_mode = #tpu.pipeline_mode<synchronous>, transform_indices = @transform_3, window_bounds = array<i64: 32, 128>}, {pipeline_mode = #tpu.pipeline_mode<synchronous>, transform_indices = @transform_4, window_bounds = array<i64: 1, 128>}, {transform_indices = @transform_5, window_bounds = array<i64: 8, 128>}]} {
    %c0 = arith.constant 0 : index
    %c0_0 = arith.constant 0 : index
    %0 = vector.load %arg1[%c0, %c0_0] : memref<8x32xf32, #tpu.memory_space<vmem>>, vector<8x32xf32>
    %c0_1 = arith.constant 0 : index
    %c0_2 = arith.constant 0 : index
    %1 = vector.load %arg2[%c0_1, %c0_2] : memref<32x32xf32, #tpu.memory_space<vmem>>, vector<32x32xf32>
    %cst = arith.constant dense<0.000000e+00> : vector<8x32xf32>
    %2 = tpu.matmul %0, %1, %cst {dimension_numbers = #tpu.dot_dimension_numbers<[1], [0], [0], [1], [0, 0, 1, 1], [], []>} : vector<8x32xf32>, vector<32x32xf32>, vector<8x32xf32> -> vector<8x32xf32>
    %c0_3 = arith.constant 0 : index
    %c0_4 = arith.constant 0 : index
    %3 = vector.load %arg3[%c0_3, %c0_4] : memref<1x32xf32, #tpu.memory_space<vmem>>, vector<1x32xf32>
    %4 = vector.broadcast %3 : vector<1x32xf32> to vector<8x32xf32>
    %5 = arith.addf %2, %4 : vector<8x32xf32>
    %6 = arith.mulf %5, %5 : vector<8x32xf32>
    %cst_5 = arith.constant dense<0.000000e+00> : vector<8xf32>
    %7 = vector.multi_reduction <add>, %6, %cst_5 [1] : vector<8x32xf32> to vector<8xf32>
    %8 = vector.shape_cast %7 : vector<8xf32> to vector<8x1xf32>
    %cst_6 = arith.constant 1.000000e-24 : f32
    %9 = vector.broadcast %cst_6 : f32 to vector<8x1xf32>
    %10 = arith.maximumf %8, %9 : vector<8x1xf32>
    %11 = math.rsqrt %10 : vector<8x1xf32>
    %12 = vector.broadcast %11 : vector<8x1xf32> to vector<8x32xf32>
    %13 = arith.mulf %5, %12 : vector<8x32xf32>
    %c0_7 = arith.constant 0 : index
    %c0_8 = arith.constant 0 : index
    %14 = vector.load %arg4[%c0_7, %c0_8] : memref<32x128xf32, #tpu.memory_space<vmem>>, vector<32x128xf32>
    %cst_9 = arith.constant dense<0.000000e+00> : vector<8x128xf32>
    %15 = tpu.matmul %13, %14, %cst_9 {dimension_numbers = #tpu.dot_dimension_numbers<[1], [0], [0], [1], [0, 0, 1, 1], [], []>} : vector<8x32xf32>, vector<32x128xf32>, vector<8x128xf32> -> vector<8x128xf32>
    %c0_10 = arith.constant 0 : index
    %c0_11 = arith.constant 0 : index
    %16 = vector.load %arg5[%c0_10, %c0_11] : memref<1x128xf32, #tpu.memory_space<vmem>>, vector<1x128xf32>
    %17 = vector.broadcast %16 : vector<1x128xf32> to vector<8x128xf32>
    %18 = arith.addf %15, %17 : vector<8x128xf32>
    %19 = arith.negf %18 : vector<8x128xf32>
    %20 = math.exp %19 : vector<8x128xf32>
    %cst_12 = arith.constant 1.000000e+00 : f32
    %21 = vector.broadcast %cst_12 : f32 to vector<8x128xf32>
    %22 = arith.addf %21, %20 : vector<8x128xf32>
    %23 = arith.divf %21, %22 : vector<8x128xf32>
    %c0_13 = arith.constant 0 : index
    %c0_14 = arith.constant 0 : index
    %24 = vector.load %arg6[%c0_13, %c0_14] : memref<8x128xf32, #tpu.memory_space<vmem>>, vector<8x128xf32>
    tpu.vector_store %arg6[%c0_13, %c0_14], %23 {strides = array<i32>} : memref<8x128xf32, #tpu.memory_space<vmem>>, vector<8x128xf32>,
    return
  }
  func.func @transform_0(%arg0: i32) -> (i32, i32) {
    %c0_i32 = arith.constant 0 : i32
    %c0_i32_0 = arith.constant 0 : i32
    return %arg0, %c0_i32 : i32, i32
  }
  func.func @transform_1(%arg0: i32) -> (i32, i32) {
    %c0_i32 = arith.constant 0 : i32
    %c0_i32_0 = arith.constant 0 : i32
    %c0_i32_1 = arith.constant 0 : i32
    return %c0_i32, %c0_i32_0 : i32, i32
  }
  func.func @transform_2(%arg0: i32) -> (i32, i32) {
    %c0_i32 = arith.constant 0 : i32
    %c0_i32_0 = arith.constant 0 : i32
    %c0_i32_1 = arith.constant 0 : i32
    return %c0_i32, %c0_i32_0 : i32, i32
  }
  func.func @transform_3(%arg0: i32) -> (i32, i32) {
    %c0_i32 = arith.constant 0 : i32
    %c0_i32_0 = arith.constant 0 : i32
    %c0_i32_1 = arith.constant 0 : i32
    return %c0_i32, %c0_i32_0 : i32, i32
  }
  func.func @transform_4(%arg0: i32) -> (i32, i32) {
    %c0_i32 = arith.constant 0 : i32
    %c0_i32_0 = arith.constant 0 : i32
    %c0_i32_1 = arith.constant 0 : i32
    return %c0_i32, %c0_i32_0 : i32, i32
  }
  func.func @transform_5(%arg0: i32) -> (i32, i32) {
    %c0_i32 = arith.constant 0 : i32
    %c0_i32_0 = arith.constant 0 : i32
    return %arg0, %c0_i32 : i32, i32
  }
}

</mosaic_0001>

<bundles_post_ra>
// kernel: tpu_custom_call.1
= control target key start
LH: loop header
LB: loop body
LE: loop exit
PB: predicated region body
PF: predicated region fallthrough
CT: control target
= control target key end

     0   :  { %10 = vsyncpa [#allocation3], 0  ;;  %s606_s0 = inlined_call_operand.hbm [shape: f32[8,32], index: 0, kind: input, shape index: {}]   ;;  %s607_s1 = inlined_call_operand.hbm [shape: f32[32,32], index: 1, kind: input, shape index: {}]   ;;  %s608_s2 = inlined_call_operand.hbm [shape: f32[1,32], index: 2, kind: input, shape index: {}]   ;;  %s609_s3 = inlined_call_operand.hbm [shape: f32[32,128], index: 3, kind: input, shape index: {}]   ;;  %s610_s4 = inlined_call_operand.hbm [shape: f32[1,128], index: 4, kind: input, shape index: {}]   ;;  %s611_s5 = inlined_call_operand.hbm [shape: f32[8,128], index: 5, kind: output, shape index: {}]  }
   0x1   :  { %11 = vsyncpa [#allocation6], 0 }
   0x2   :  { %12 = vsyncpa [#allocation9], 0 }
   0x3   :  { %13 = vsyncpa [#allocation4], 0  ;;  %s490_s18 = smov [#allocation5]   ;;  %s350_s22 = scalar_lea.hbm %s607_s1, 512 }
   0x4   :  { %s29_s19 = sshll.u32 %s490_s18, 4  ;;  %p351_p0 = scmp.ne.s32.totalorder %s607_s1, %s350_s22  ;;  %s30_s19 = int_to_ptr.vmem [resolvable:$true] %s29_s19 }
   0x5   :  { %p354_p1 = scmp.lt.u32.totalorder %s350_s22, %s607_s1 }
   0x7   :  { %p356_p2 = pnand %p354_p1, %p351_p0 }
   0x9   :  { %359 = shalt.err (!%p356_p2)
}
   0xa   :  { %s360_s27 = scalar_lea.vmem %s30_s19, 512  ;;  %p365_p4 = scmp.lt.s32.totalorder %s30_s19, %s30_s19 }
   0xb   :  { %p361_p3 = scmp.ne.s32.totalorder %s30_s19, %s360_s27  ;;  %p366_p5 = scmp.lt.s32.totalorder %s360_s27, %s360_s27 }
   0xd   :  { %p367_p6 = por %p366_p5, %p365_p4 }
   0xf   :  { %p368_p7 = pnand %p367_p6, %p361_p3 }
  0x11   :  { %371 = shalt.err (!%p368_p7)
}
  0x12   :  { %s491_s28 = smov 128   ;;  %s492_s29 = smov 8  }
  0x13   :  { %35 = dma.hbm_to_vmem [thread:$0]  %s607_s1, 512, %s30_s19, [#allocation6], %s491_s28, %s491_s28, %s492_s29  }
  0x14   :  { %s493_s7 = smov [#allocation8]   ;;  %s494_s9 = smov [#allocation2]  }
  0x15   :  { %s51_s8 = sshll.u32 %s493_s7, 4  ;;  %s20_s10 = sshll.u32 %s494_s9, 4  ;;  %s52_s8 = int_to_ptr.vmem [resolvable:$true] %s51_s8  ;;  %s21_s10 = int_to_ptr.vmem [resolvable:$true] %s20_s10 }
  0x16   :  { %s372_s13 = scalar_lea.hbm %s609_s3, 512 }
  0x17   :  { %p373_p8 = scmp.ne.s32.totalorder %s609_s3, %s372_s13  ;;  %p376_p9 = scmp.lt.u32.totalorder %s372_s13, %s609_s3 }
  0x19   :  { %p378_p10 = pnand %p376_p9, %p373_p8 }
  0x1b   :  { %381 = shalt.err (!%p378_p10)
}
  0x1c   :  { %s382_s1 = scalar_lea.vmem %s52_s8, 512  ;;  %p387_p12 = scmp.lt.s32.totalorder %s52_s8, %s52_s8 }
  0x1d   :  { %p383_p11 = scmp.ne.s32.totalorder %s52_s8, %s382_s1  ;;  %p388_p13 = scmp.lt.s32.totalorder %s382_s1, %s382_s1 }
  0x1f   :  { %p389_p0 = por %p388_p13, %p387_p12 }
  0x21   :  { %p390_p1 = pnand %p389_p0, %p383_p11 }
  0x23   :  { %393 = shalt.err (!%p390_p1)
}
  0x24   :  { %57 = dma.hbm_to_vmem [thread:$0]  %s609_s3, 512, %s52_s8, [#allocation9], %s491_s28, %s491_s28, %s492_s29  }
  0x25   :  { %s394_s22 = scalar_lea.hbm %s606_s0, 128 }
  0x26   :  { %p395_p2 = scmp.ne.s32.totalorder %s606_s0, %s394_s22  ;;  %p398_p3 = scmp.lt.u32.totalorder %s394_s22, %s606_s0 }
  0x28   :  { %p400_p4 = pnand %p398_p3, %p395_p2 }
  0x2a   :  { %403 = shalt.err (!%p400_p4)
}
  0x2b   :  { %s404_s27 = scalar_lea.vmem %s21_s10, 128  ;;  %p409_p6 = scmp.lt.s32.totalorder %s21_s10, %s21_s10 }
  0x2c   :  { %p405_p5 = scmp.ne.s32.totalorder %s21_s10, %s404_s27  ;;  %p410_p7 = scmp.lt.s32.totalorder %s404_s27, %s404_s27 }
  0x2e   :  { %p411_p8 = por %p410_p7, %p409_p6 }
  0x30   :  { %p412_p9 = pnand %p411_p8, %p405_p5 }
  0x32   :  { %415 = shalt.err (!%p412_p9)
}
  0x33   :  { %23 = dma.hbm_to_vmem [thread:$0]  %s606_s0, 128, %s21_s10, [#allocation3]  }
  0x34   :  { %s495_s29 = smov [#allocation7]   ;;  %s496_s6 = smov [#allocation10]  }
  0x35   :  { %s42_s30 = sshll.u32 %s495_s29, 4  ;;  %s64_s7 = sshll.u32 %s496_s6, 4  ;;  %s43_s30 = int_to_ptr.vmem [resolvable:$true] %s42_s30  ;;  %s65_s7 = int_to_ptr.vmem [resolvable:$true] %s64_s7 }
  0x36   :  { %s416_s11 = scalar_lea.hbm %s608_s2, 16 }
  0x37   :  { %p417_p10 = scmp.ne.s32.totalorder %s608_s2, %s416_s11  ;;  %p420_p11 = scmp.lt.u32.totalorder %s416_s11, %s608_s2 }
  0x39   :  { %p422_p12 = pnand %p420_p11, %p417_p10 }
  0x3b   :  { %425 = shalt.err (!%p422_p12)
}
  0x3c   :  { %s426_s0 = scalar_lea.vmem %s43_s30, 16  ;;  %s430_s10 = scalar_lea.vmem %s43_s30, 32 }
  0x3d   :  { %p427_p13 = scmp.ne.s32.totalorder %s43_s30, %s426_s0  ;;  %p431_p0 = scmp.lt.s32.totalorder %s43_s30, %s43_s30 }
  0x3e   :  { %p432_p1 = scmp.lt.s32.totalorder %s430_s10, %s426_s0 }
  0x40   :  { %p433_p2 = por %p432_p1, %p431_p0 }
  0x42   :  { %p434_p3 = pnand %p433_p2, %p427_p13 }
  0x44   :  { %437 = shalt.err (!%p434_p3)
}
  0x45   :  { %45 = dma.hbm_to_vmem [thread:$0]  %s608_s2, 16, %s43_s30, [#allocation6]  }
  0x46   :  { %s438_s19 = scalar_lea.hbm %s610_s4, 16 }
  0x47   :  { %p439_p4 = scmp.ne.s32.totalorder %s610_s4, %s438_s19  ;;  %p442_p5 = scmp.lt.u32.totalorder %s438_s19, %s610_s4 }
  0x49   :  { %p444_p6 = pnand %p442_p5, %p439_p4 }
  0x4b   :  { %447 = shalt.err (!%p444_p6)
}
  0x4c   :  { %s448_s24 = scalar_lea.vmem %s65_s7, 16  ;;  %s452_s25 = scalar_lea.vmem %s65_s7, 32 }
  0x4d   :  { %p449_p7 = scmp.ne.s32.totalorder %s65_s7, %s448_s24  ;;  %p453_p8 = scmp.lt.s32.totalorder %s65_s7, %s65_s7 }
  0x4e   :  { %p454_p9 = scmp.lt.s32.totalorder %s452_s25, %s448_s24 }
  0x50   :  { %p455_p10 = por %p454_p9, %p453_p8 }
  0x52   :  { %p456_p11 = pnand %p455_p10, %p449_p7 }
  0x54   :  { %459 = shalt.err (!%p456_p11)
}
  0x55   :  { %67 = dma.hbm_to_vmem [thread:$0]  %s610_s4, 16, %s65_s7, [#allocation9]  }
  0x56   :  { %482 = dma.done.wait [#allocation3], 128  }
  0x57   :  { %483 = vsyncadd [#allocation3], 4294967168 }
  0x58   :  { %484 = dma.done.wait [#allocation6], 528  }
  0x59   :  { %485 = vsyncadd [#allocation6], 4294966768 }
  0x5a   :  { %486 = dma.done.wait [#allocation9], 528  }
  0x5b   :  { %487 = vsyncadd [#allocation9], 4294966768  ;;  %v497_v0 = vmov 0.0|0.0   ;;  %vm498_vm0 = vmmov 0   ;;  %v499_v1 = vmov 0.0   ;;  %v84_v2 = vld [vmem:[#allocation5] sm:$0xff] }
  0x5c   :  { %321 = vmatprep.subr.bf16.mxu0 %v497_v0  ;;  %307 = vmatprep.mubr.msk.f32.mxu0 %vm498_vm0, %v499_v1  ;;  %v85_v3 = vld [vmem:[#allocation5 + $0x8] sm:$0xff]  ;;  %v86_v4 = vld [vmem:[#allocation5 + $0x10] sm:$0xff]  ;;  %v87_v6 = vld [vmem:[#allocation5 + $0x18] sm:$0xff]  ;;  %vm95_vm1 = vcmask 261120   ;;  %s500_s4 = smov [#allocation11]  }
  0x5d   :  { %327 = vmatprep.subr.bf16.mxu1 %v497_v0  ;;  %318 = vmatprep.mubr.msk.f32.mxu1 %vm498_vm0, %v499_v1  ;;  %v322_v5 = vpack.c.bf16 %v85_v3, %v84_v2  ;;  %v325_v7 = vpack.c.bf16 %v87_v6, %v86_v4  ;;  %v83_v8 = vld [vmem:[#allocation2] sm:$0xff]  ;;  %v284_v9 = vld [vmem:[#allocation7] ss:$0 sm:$0xff]  ;;  %v176_v15 = vld [vmem:[#allocation8] sm:$0xff]  ;;  %s273_s27 = sshll.u32 %s500_s4, 4  ;;  %s274_s27 = int_to_ptr.vmem [resolvable:$true] %s273_s27 }
  0x5e   :  { %v177_v16 = vld [vmem:[#allocation8 + $0x8] sm:$0xff]  ;;  %v178_v17 = vld [vmem:[#allocation8 + $0x10] sm:$0xff]  ;;  %v179_v19 = vld [vmem:[#allocation8 + $0x18] sm:$0xff]  ;;  %s460_s3 = scalar_lea.vmem %s274_s27, 128  ;;  %p465_p13 = scmp.lt.s32.totalorder %s274_s27, %s274_s27 }
  0x5f   :  { %323 = vmatpush3.bf16.msra.mxu0 %v322_v5  ;;  %v328_v18 = vpack.c.bf16 %v177_v16, %v176_v15  ;;  %v331_v20 = vpack.c.bf16 %v179_v19, %v178_v17  ;;  %v286_v25 = vld [vmem:[#allocation10] ss:$0 sm:$0xff]  ;;  %p461_p12 = scmp.ne.s32.totalorder %s274_s27, %s460_s3  ;;  %p466_p0 = scmp.lt.s32.totalorder %s460_s3, %s460_s3 }
  0x60   :  { %324 = vmatprep.subr.bf16.mxu0 %v497_v0 }
  0x61   :  { %329 = vmatpush3.bf16.msra.mxu1 %v328_v18  ;;  %p467_p1 = por %p466_p0, %p465_p13 }
  0x62   :  { %330 = vmatprep.subr.bf16.mxu1 %v497_v0 }
  0x63   :  { %326 = vmatpush3.bf16.msra.mxu0 %v325_v7  ;;  %p468_p2 = pnand %p467_p1, %p461_p12 }
  0x65   :  { %332 = vmatpush3.bf16.msra.mxu1 %v331_v20 }
  0x66   :  { %308 = vmatmul.mubr.msk.f32.vlgmr.msra.gmra.mrb[0].mxu0 %vm95_vm1, %v83_v8 }
 0x139   :  { %v165_v10 = vpop.f32.mrb[0].mxu0 }
 0x13a   :  { %v166_v11 = vadd.f32 %v284_v9, %v165_v10  ;;  %v309_v12 = vpop.f32.mrb[1].mxu0 }
 0x13c   :  { %v169_v13 = vmul.f32 %v166_v11, %v166_v11 }
 0x13e   :  { %v170_v14 = vsel %vm95_vm1, %v169_v13, 0.0 }
 0x13f   :  { %171 = vadd.xlane.f32.xlu0 %v170_v14 }
 0x1cc   :  { %v172_v21 = vpop.xlane.xlu0 %171 }
 0x1cd   :  { %v173_v22 = vmax.f32 %v172_v21, 1e-24 }
 0x1cf   :  { %344 = vrsqrt.f32 %v173_v22 }
 0x1d9   :  { %v345_v23 = vpop.eup %344 }
 0x1da   :  { %v175_v24 = vmul.f32 %v345_v23, %v166_v11 }
 0x1dc   :  { %319 = vmatmul.mubr.msk.f32.vlgmr.msra.gmra.mrb[0].mxu1 %vm95_vm1, %v175_v24 }
 0x2af   :  { %v256_v26 = vpop.f32.mrb[0].mxu1 }
 0x2b0   :  { %v257_v27 = vadd.f32 %v286_v25, %v256_v26  ;;  %v320_v28 = vpop.f32.mrb[1].mxu1 }
 0x2b2   :  { %v288_v29 = vmul.f32 -1.442695, %v257_v27 }
 0x2b4   :  { %346 = vpow2.f32 %v288_v29 }
 0x2be   :  { %v347_v30 = vpop.eup %346 }
 0x2bf   :  { %v263_v31 = vadd.f32 1.0, %v347_v30 }
 0x2c1   :  { %348 = vrcp.f32 %v263_v31 }
 0x2cb   :  { %v349_v32 = vpop.eup %348 }
 0x2cc   :  { %266 = vst [vmem:[#allocation11] sm:$0xff] %v349_v32 }
 0x2cd   :  { %471 = shalt.err (!%p468_p2)
}
 0x2ce   :  { %s472_s30 = scalar_lea.hbm %s611_s5, 128 }
 0x2cf   :  { %p473_p3 = scmp.ne.s32.totalorder %s611_s5, %s472_s30  ;;  %p476_p4 = scmp.lt.u32.totalorder %s472_s30, %s611_s5 }
 0x2d1   :  { %p478_p5 = pnand %p476_p4, %p473_p3 }
 0x2d3   :  { %481 = shalt.err (!%p478_p5)
}
 0x2d4   :  { %276 = dma.vmem_to_hbm [thread:$0]  %s274_s27, 128, %s611_s5, [#allocation4]  }
 0x2d5   :  { %488 = dma.done.wait [#allocation4], 128  }
 0x2d6   :  { %489 = vsyncadd [#allocation4], 4294967168 }
 0x2d7   :  { %280 = vsyncpa [#allocation3], 1 }
 0x2d8   :  { %281 = vsyncpa [#allocation6], 1 }
 0x2d9   :  { %282 = vsyncpa [#allocation9], 1 }
 0x2da   :  { %283 = vsyncpa [#allocation4], 1 }

</bundles_post_ra>
